<compile_context>
chip_gen: v5e
topology: v5e:2x2
jax: 0.10.0
libtpu: 0.0.40
codegen_flags: <defaults>
</compile_context>

<pallas_src>
import jax
import jax.numpy as jnp
from jax.experimental import pallas as pl
from jax.experimental.pallas import tpu as pltpu

NEG_SLOPE = 0.01   # nn.LeakyReLU() default
HIDDEN_PAD = 128   # 100 -> 128 (same vreg footprint, lane-aligned)
OUT_PAD = 128      # 3  -> 128 (lane-dense output stores)


def _round_up(n, m):
    return (n + m - 1) // m * m


def _leaky_relu(v):
    return jnp.where(v > 0, v, NEG_SLOPE * v)


def _make_kernel(tb, n_sub):
    """Build the kernel for a batch tile of `tb` rows, split into `n_sub` sub-tiles."""
    sub = tb // n_sub

    def kernel(x_ref, w1_ref, w2_ref, w3_ref, wo_ref, b_ref, o_ref):
        # Weights are resident (same block every grid step); biases are packed
        # into one (4, 128) f32 array to avoid many tiny DMAs.
        w1 = w1_ref[...]
        w2 = w2_ref[...]
        w3 = w3_ref[...]
        wo = wo_ref[...]
        b1 = b_ref[0:1, :]
        b2 = b_ref[1:2, :]
        b3 = b_ref[2:3, :]
        bo = b_ref[3:4, :]

        # TODO(synk): training-mode Dropout(0.3) would use pltpu.prng_seed +
        # pltpu.prng_random_bits; eval-mode forward is identity so it is skipped.
        for s in range(n_sub):          # static 2-way unroll of independent sub-tiles
            lo = s * sub
            xs = x_ref[lo:lo + sub, :]

            # fc1 -> leaky_relu
            h = jnp.dot(xs.astype(jnp.bfloat16), w1,
                        preferred_element_type=jnp.float32)
            h = _leaky_relu(h + b1)
            # fc2 -> leaky_relu
            h = jnp.dot(h.astype(jnp.bfloat16), w2,
                        preferred_element_type=jnp.float32)
            h = _leaky_relu(h + b2)
            # fc3 -> leaky_relu
            h = jnp.dot(h.astype(jnp.bfloat16), w3,
                        preferred_element_type=jnp.float32)
            h = _leaky_relu(h + b3)
            # output layer (no activation); lane-dense 128-wide store
            out = jnp.dot(h.astype(jnp.bfloat16), wo,
                          preferred_element_type=jnp.float32)
            o_ref[lo:lo + sub, :] = (out + bo).astype(o_ref.dtype)

    return kernel


def ffnnet_forward(x, packed, *, out_dim=3, tb=1024):
    """x: (B, input_size) f32.  packed: output of pack_params()."""
    B, in_dim = x.shape

    # Batch tile: at most `tb`, always a multiple of 8 (sublane alignment).
    TB = min(tb, _round_up(B, 8))
    Bp = _round_up(B, TB)
    if Bp != B:
        x = jnp.pad(x, ((0, Bp - B), (0, 0)))

    n_sub = 2 if (TB >= 16 and TB % 16 == 0) else 1
    grid = (Bp // TB,)

    def resident(arr):
        # Full-array block, same block index every step -> stays in VMEM.
        return pl.BlockSpec(arr.shape, lambda i: (0, 0))

    out_padded = pl.pallas_call(
        _make_kernel(TB, n_sub),
        out_shape=jax.ShapeDtypeStruct((Bp, OUT_PAD), jnp.float32),
        grid=grid,
        in_specs=[
            pl.BlockSpec((TB, in_dim), lambda i: (i, 0)),   # streamed x tiles
            resident(packed["w1"]),
            resident(packed["w2"]),
            resident(packed["w3"]),
            resident(packed["wo"]),
            resident(packed["b"]),
        ],
        out_specs=pl.BlockSpec((TB, OUT_PAD), lambda i: (i, 0)),
        compiler_params=pltpu.CompilerParams(
            dimension_semantics=("parallel",)),             # shard over v7x's 2 TCs
    )(x, packed["w1"], packed["w2"], packed["w3"], packed["wo"], packed["b"])

    return out_padded[:B, :out_dim]


def init_params(key, input_size, hidden=100, out_dim=3):
    """Deterministic synthetic init (PyTorch-style uniform bounds), f32, (in, out) layout."""
    ks = jax.random.split(key, 8)

    def linear(kw, kb, fan_in, fan_out):
        bound = 1.0 / jnp.sqrt(fan_in)
        w = jax.random.uniform(kw, (fan_in, fan_out), jnp.float32, -bound, bound)
        b = jax.random.uniform(kb, (1, fan_out), jnp.float32, -bound, bound)
        return w, b

    w1, b1 = linear(ks[0], ks[1], input_size, hidden)
    w2, b2 = linear(ks[2], ks[3], hidden, hidden)
    w3, b3 = linear(ks[4], ks[5], hidden, hidden)
    wo, bo = linear(ks[6], ks[7], hidden, out_dim)
    return dict(w1=w1, b1=b1, w2=w2, b2=b2, w3=w3, b3=b3, wo=wo, bo=bo)


def pack_params(p):
    """Pad hidden/out dims to 128, cast weights to bf16, pack biases into (4,128) f32."""
    in_dim = p["w1"].shape[0]

    def pad_w(w, rows, cols):
        return jnp.pad(w, ((0, rows - w.shape[0]), (0, cols - w.shape[1])))

    def pad_b(b, cols):
        b = b.reshape(1, -1)
        return jnp.pad(b, ((0, 0), (0, cols - b.shape[1])))

    w1 = pad_w(p["w1"], in_dim, HIDDEN_PAD).astype(jnp.bfloat16)
    w2 = pad_w(p["w2"], HIDDEN_PAD, HIDDEN_PAD).astype(jnp.bfloat16)
    w3 = pad_w(p["w3"], HIDDEN_PAD, HIDDEN_PAD).astype(jnp.bfloat16)
    wo = pad_w(p["wo"], HIDDEN_PAD, OUT_PAD).astype(jnp.bfloat16)
    b = jnp.concatenate(
        [pad_b(p["b1"], HIDDEN_PAD),
         pad_b(p["b2"], HIDDEN_PAD),
         pad_b(p["b3"], HIDDEN_PAD),
         pad_b(p["bo"], OUT_PAD)], axis=0).astype(jnp.float32)
    return dict(w1=w1, w2=w2, w3=w3, wo=wo, b=b)


def reference_forward_packed(x, packed, out_dim=3):
    """Pure-JAX reference with identical bf16-input / f32-accum math."""
    def dot16(a, w):
        return jnp.dot(a.astype(jnp.bfloat16), w, preferred_element_type=jnp.float32)
    b = packed["b"]
    h = _leaky_relu(dot16(x, packed["w1"]) + b[0:1, :])
    h = _leaky_relu(dot16(h, packed["w2"]) + b[1:2, :])
    h = _leaky_relu(dot16(h, packed["w3"]) + b[2:3, :])
    out = dot16(h, packed["wo"]) + b[3:4, :]
    return out[:, :out_dim]


def reference_forward_f32(x, p):
    """Full-f32 reference (PyTorch semantics) — sanity check with loose tolerance."""
    h = _leaky_relu(x @ p["w1"] + p["b1"])
    h = _leaky_relu(h @ p["w2"] + p["b2"])
    h = _leaky_relu(h @ p["w3"] + p["b3"])
    return h @ p["wo"] + p["bo"]


if __name__ == "__main__":
    key = jax.random.PRNGKey(0)
    k_x, k_p = jax.random.split(key)

    batch = 16
    input_size = 32

    x = jax.random.normal(k_x, (batch, input_size), dtype=jnp.float32)
    params = init_params(k_p, input_size)
    packed = pack_params(params)

    out = jax.block_until_ready(ffnnet_forward(x, packed))
    assert out.shape == (batch, 3), out.shape

    ref_bf16 = reference_forward_packed(x, packed)
    assert jnp.allclose(out, ref_bf16, atol=1e-4, rtol=1e-4), "mismatch vs bf16-matched reference"

    ref_f32 = reference_forward_f32(x, params)
    assert jnp.allclose(out, ref_f32, atol=5e-2, rtol=5e-2), "mismatch vs f32 reference"

    # Non-multiple-of-tile batch to exercise the pad-and-slice path.
    x2 = jax.random.normal(k_x, (10, input_size), dtype=jnp.float32)
    out2 = jax.block_until_ready(ffnnet_forward(x2, packed))
    ref2 = reference_forward_packed(x2, packed)
    assert out2.shape == (10, 3), out2.shape
    assert jnp.allclose(out2, ref2, atol=1e-4, rtol=1e-4), "mismatch on padded-batch path"

    print("KERNEL_OK")
</pallas_src>

<mosaic_0001>
module attributes {stable_mosaic.version = 11 : i64} {
  func.func @kernel(%arg0: i32, %arg1: memref<16x32xf32, #tpu.memory_space<vmem>>, %arg2: memref<32x128xbf16, #tpu.memory_space<vmem>>, %arg3: memref<128x128xbf16, #tpu.memory_space<vmem>>, %arg4: memref<128x128xbf16, #tpu.memory_space<vmem>>, %arg5: memref<128x128xbf16, #tpu.memory_space<vmem>>, %arg6: memref<4x128xf32, #tpu.memory_space<vmem>>, %arg7: memref<16x128xf32, #tpu.memory_space<vmem>>) attributes {dimension_semantics = [#tpu.dimension_semantics<parallel>], iteration_bounds = array<i64: 1>, scalar_prefetch = 0 : i64, scratch_operands = 0 : i64, tpu.core_type = #tpu.core_type<tc>, window_params = [{transform_indices = @transform_0, window_bounds = array<i64: 16, 32>}, {pipeline_mode = #tpu.pipeline_mode<synchronous>, transform_indices = @transform_1, window_bounds = array<i64: 32, 128>}, {pipeline_mode = #tpu.pipeline_mode<synchronous>, transform_indices = @transform_2, window_bounds = array<i64: 128, 128>}, {pipeline_mode = #tpu.pipeline_mode<synchronous>, transform_indices = @transform_3, window_bounds = array<i64: 128, 128>}, {pipeline_mode = #tpu.pipeline_mode<synchronous>, transform_indices = @transform_4, window_bounds = array<i64: 128, 128>}, {pipeline_mode = #tpu.pipeline_mode<synchronous>, transform_indices = @transform_5, window_bounds = array<i64: 4, 128>}, {transform_indices = @transform_6, window_bounds = array<i64: 16, 128>}]} {
    %c0 = arith.constant 0 : index
    %c0_0 = arith.constant 0 : index
    %0 = vector.load %arg2[%c0, %c0_0] : memref<32x128xbf16, #tpu.memory_space<vmem>>, vector<32x128xbf16>
    %c0_1 = arith.constant 0 : index
    %c0_2 = arith.constant 0 : index
    %1 = vector.load %arg3[%c0_1, %c0_2] : memref<128x128xbf16, #tpu.memory_space<vmem>>, vector<128x128xbf16>
    %c0_3 = arith.constant 0 : index
    %c0_4 = arith.constant 0 : index
    %2 = vector.load %arg4[%c0_3, %c0_4] : memref<128x128xbf16, #tpu.memory_space<vmem>>, vector<128x128xbf16>
    %c0_5 = arith.constant 0 : index
    %c0_6 = arith.constant 0 : index
    %3 = vector.load %arg5[%c0_5, %c0_6] : memref<128x128xbf16, #tpu.memory_space<vmem>>, vector<128x128xbf16>
    %c0_7 = arith.constant 0 : index
    %c0_8 = arith.constant 0 : index
    %4 = vector.load %arg6[%c0_7, %c0_8] : memref<4x128xf32, #tpu.memory_space<vmem>>, vector<1x128xf32>
    %c1 = arith.constant 1 : index
    %c0_9 = arith.constant 0 : index
    %5 = vector.load %arg6[%c1, %c0_9] : memref<4x128xf32, #tpu.memory_space<vmem>>, vector<1x128xf32>
    %c2 = arith.constant 2 : index
    %c0_10 = arith.constant 0 : index
    %6 = vector.load %arg6[%c2, %c0_10] : memref<4x128xf32, #tpu.memory_space<vmem>>, vector<1x128xf32>
    %c3 = arith.constant 3 : index
    %c0_11 = arith.constant 0 : index
    %7 = vector.load %arg6[%c3, %c0_11] : memref<4x128xf32, #tpu.memory_space<vmem>>, vector<1x128xf32>
    %c0_12 = arith.constant 0 : index
    %c0_13 = arith.constant 0 : index
    %8 = vector.load %arg1[%c0_12, %c0_13] : memref<16x32xf32, #tpu.memory_space<vmem>>, vector<8x32xf32>
    %9 = arith.truncf %8 : vector<8x32xf32> to vector<8x32xbf16>
    %cst = arith.constant dense<0.000000e+00> : vector<8x128xf32>
    %10 = tpu.matmul %9, %0, %cst {dimension_numbers = #tpu.dot_dimension_numbers<[1], [0], [0], [1], [0, 0, 1, 1], [], []>} : vector<8x32xbf16>, vector<32x128xbf16>, vector<8x128xf32> -> vector<8x128xf32>
    %11 = vector.broadcast %4 : vector<1x128xf32> to vector<8x128xf32>
    %12 = arith.addf %10, %11 : vector<8x128xf32>
    %cst_14 = arith.constant 0.000000e+00 : f32
    %13 = vector.broadcast %cst_14 : f32 to vector<8x128xf32>
    %14 = arith.cmpf ogt, %12, %13 : vector<8x128xf32>
    %cst_15 = arith.constant 0.00999999977 : f32
    %15 = vector.broadcast %cst_15 : f32 to vector<8x128xf32>
    %16 = arith.mulf %15, %12 : vector<8x128xf32>
    %17 = arith.select %14, %12, %16 : vector<8x128xi1>, vector<8x128xf32>
    %18 = arith.truncf %17 : vector<8x128xf32> to vector<8x128xbf16>
    %cst_16 = arith.constant dense<0.000000e+00> : vector<8x128xf32>
    %19 = tpu.matmul %18, %1, %cst_16 {dimension_numbers = #tpu.dot_dimension_numbers<[1], [0], [0], [1], [0, 0, 1, 1], [], []>} : vector<8x128xbf16>, vector<128x128xbf16>, vector<8x128xf32> -> vector<8x128xf32>
    %20 = vector.broadcast %5 : vector<1x128xf32> to vector<8x128xf32>
    %21 = arith.addf %19, %20 : vector<8x128xf32>
    %cst_17 = arith.constant 0.000000e+00 : f32
    %22 = vector.broadcast %cst_17 : f32 to vector<8x128xf32>
    %23 = arith.cmpf ogt, %21, %22 : vector<8x128xf32>
    %cst_18 = arith.constant 0.00999999977 : f32
    %24 = vector.broadcast %cst_18 : f32 to vector<8x128xf32>
    %25 = arith.mulf %24, %21 : vector<8x128xf32>
    %26 = arith.select %23, %21, %25 : vector<8x128xi1>, vector<8x128xf32>
    %27 = arith.truncf %26 : vector<8x128xf32> to vector<8x128xbf16>
    %cst_19 = arith.constant dense<0.000000e+00> : vector<8x128xf32>
    %28 = tpu.matmul %27, %2, %cst_19 {dimension_numbers = #tpu.dot_dimension_numbers<[1], [0], [0], [1], [0, 0, 1, 1], [], []>} : vector<8x128xbf16>, vector<128x128xbf16>, vector<8x128xf32> -> vector<8x128xf32>
    %29 = vector.broadcast %6 : vector<1x128xf32> to vector<8x128xf32>
    %30 = arith.addf %28, %29 : vector<8x128xf32>
    %cst_20 = arith.constant 0.000000e+00 : f32
    %31 = vector.broadcast %cst_20 : f32 to vector<8x128xf32>
    %32 = arith.cmpf ogt, %30, %31 : vector<8x128xf32>
    %cst_21 = arith.constant 0.00999999977 : f32
    %33 = vector.broadcast %cst_21 : f32 to vector<8x128xf32>
    %34 = arith.mulf %33, %30 : vector<8x128xf32>
    %35 = arith.select %32, %30, %34 : vector<8x128xi1>, vector<8x128xf32>
    %36 = arith.truncf %35 : vector<8x128xf32> to vector<8x128xbf16>
    %cst_22 = arith.constant dense<0.000000e+00> : vector<8x128xf32>
    %37 = tpu.matmul %36, %3, %cst_22 {dimension_numbers = #tpu.dot_dimension_numbers<[1], [0], [0], [1], [0, 0, 1, 1], [], []>} : vector<8x128xbf16>, vector<128x128xbf16>, vector<8x128xf32> -> vector<8x128xf32>
    %38 = vector.broadcast %7 : vector<1x128xf32> to vector<8x128xf32>
    %39 = arith.addf %37, %38 : vector<8x128xf32>
    %c0_23 = arith.constant 0 : index
    %c0_24 = arith.constant 0 : index
    %40 = vector.load %arg7[%c0_23, %c0_24] : memref<16x128xf32, #tpu.memory_space<vmem>>, vector<8x128xf32>
    tpu.vector_store %arg7[%c0_23, %c0_24], %39 {strides = array<i32>} : memref<16x128xf32, #tpu.memory_space<vmem>>, vector<8x128xf32>,
    %c8 = arith.constant 8 : index
    %c0_25 = arith.constant 0 : index
    %41 = vector.load %arg1[%c8, %c0_25] : memref<16x32xf32, #tpu.memory_space<vmem>>, vector<8x32xf32>
    %42 = arith.truncf %41 : vector<8x32xf32> to vector<8x32xbf16>
    %cst_26 = arith.constant dense<0.000000e+00> : vector<8x128xf32>
    %43 = tpu.matmul %42, %0, %cst_26 {dimension_numbers = #tpu.dot_dimension_numbers<[1], [0], [0], [1], [0, 0, 1, 1], [], []>} : vector<8x32xbf16>, vector<32x128xbf16>, vector<8x128xf32> -> vector<8x128xf32>
    %44 = vector.broadcast %4 : vector<1x128xf32> to vector<8x128xf32>
    %45 = arith.addf %43, %44 : vector<8x128xf32>
    %cst_27 = arith.constant 0.000000e+00 : f32
    %46 = vector.broadcast %cst_27 : f32 to vector<8x128xf32>
    %47 = arith.cmpf ogt, %45, %46 : vector<8x128xf32>
    %cst_28 = arith.constant 0.00999999977 : f32
    %48 = vector.broadcast %cst_28 : f32 to vector<8x128xf32>
    %49 = arith.mulf %48, %45 : vector<8x128xf32>
    %50 = arith.select %47, %45, %49 : vector<8x128xi1>, vector<8x128xf32>
    %51 = arith.truncf %50 : vector<8x128xf32> to vector<8x128xbf16>
    %cst_29 = arith.constant dense<0.000000e+00> : vector<8x128xf32>
    %52 = tpu.matmul %51, %1, %cst_29 {dimension_numbers = #tpu.dot_dimension_numbers<[1], [0], [0], [1], [0, 0, 1, 1], [], []>} : vector<8x128xbf16>, vector<128x128xbf16>, vector<8x128xf32> -> vector<8x128xf32>
    %53 = vector.broadcast %5 : vector<1x128xf32> to vector<8x128xf32>
    %54 = arith.addf %52, %53 : vector<8x128xf32>
    %cst_30 = arith.constant 0.000000e+00 : f32
    %55 = vector.broadcast %cst_30 : f32 to vector<8x128xf32>
    %56 = arith.cmpf ogt, %54, %55 : vector<8x128xf32>
    %cst_31 = arith.constant 0.00999999977 : f32
    %57 = vector.broadcast %cst_31 : f32 to vector<8x128xf32>
    %58 = arith.mulf %57, %54 : vector<8x128xf32>
    %59 = arith.select %56, %54, %58 : vector<8x128xi1>, vector<8x128xf32>
    %60 = arith.truncf %59 : vector<8x128xf32> to vector<8x128xbf16>
    %cst_32 = arith.constant dense<0.000000e+00> : vector<8x128xf32>
    %61 = tpu.matmul %60, %2, %cst_32 {dimension_numbers = #tpu.dot_dimension_numbers<[1], [0], [0], [1], [0, 0, 1, 1], [], []>} : vector<8x128xbf16>, vector<128x128xbf16>, vector<8x128xf32> -> vector<8x128xf32>
    %62 = vector.broadcast %6 : vector<1x128xf32> to vector<8x128xf32>
    %63 = arith.addf %61, %62 : vector<8x128xf32>
    %cst_33 = arith.constant 0.000000e+00 : f32
    %64 = vector.broadcast %cst_33 : f32 to vector<8x128xf32>
    %65 = arith.cmpf ogt, %63, %64 : vector<8x128xf32>
    %cst_34 = arith.constant 0.00999999977 : f32
    %66 = vector.broadcast %cst_34 : f32 to vector<8x128xf32>
    %67 = arith.mulf %66, %63 : vector<8x128xf32>
    %68 = arith.select %65, %63, %67 : vector<8x128xi1>, vector<8x128xf32>
    %69 = arith.truncf %68 : vector<8x128xf32> to vector<8x128xbf16>
    %cst_35 = arith.constant dense<0.000000e+00> : vector<8x128xf32>
    %70 = tpu.matmul %69, %3, %cst_35 {dimension_numbers = #tpu.dot_dimension_numbers<[1], [0], [0], [1], [0, 0, 1, 1], [], []>} : vector<8x128xbf16>, vector<128x128xbf16>, vector<8x128xf32> -> vector<8x128xf32>
    %71 = vector.broadcast %7 : vector<1x128xf32> to vector<8x128xf32>
    %72 = arith.addf %70, %71 : vector<8x128xf32>
    %c8_36 = arith.constant 8 : index
    %c0_37 = arith.constant 0 : index
    %73 = vector.load %arg7[%c8_36, %c0_37] : memref<16x128xf32, #tpu.memory_space<vmem>>, vector<8x128xf32>
    tpu.vector_store %arg7[%c8_36, %c0_37], %72 {strides = array<i32>} : memref<16x128xf32, #tpu.memory_space<vmem>>, vector<8x128xf32>,
    return
  }
  func.func @transform_0(%arg0: i32) -> (i32, i32) {
    %c0_i32 = arith.constant 0 : i32
    %c0_i32_0 = arith.constant 0 : i32
    return %arg0, %c0_i32 : i32, i32
  }
  func.func @transform_1(%arg0: i32) -> (i32, i32) {
    %c0_i32 = arith.constant 0 : i32
    %c0_i32_0 = arith.constant 0 : i32
    %c0_i32_1 = arith.constant 0 : i32
    return %c0_i32, %c0_i32_0 : i32, i32
  }
  func.func @transform_2(%arg0: i32) -> (i32, i32) {
    %c0_i32 = arith.constant 0 : i32
    %c0_i32_0 = arith.constant 0 : i32
    %c0_i32_1 = arith.constant 0 : i32
    return %c0_i32, %c0_i32_0 : i32, i32
  }
  func.func @transform_3(%arg0: i32) -> (i32, i32) {
    %c0_i32 = arith.constant 0 : i32
    %c0_i32_0 = arith.constant 0 : i32
    %c0_i32_1 = arith.constant 0 : i32
    return %c0_i32, %c0_i32_0 : i32, i32
  }
  func.func @transform_4(%arg0: i32) -> (i32, i32) {
    %c0_i32 = arith.constant 0 : i32
    %c0_i32_0 = arith.constant 0 : i32
    %c0_i32_1 = arith.constant 0 : i32
    return %c0_i32, %c0_i32_0 : i32, i32
  }
  func.func @transform_5(%arg0: i32) -> (i32, i32) {
    %c0_i32 = arith.constant 0 : i32
    %c0_i32_0 = arith.constant 0 : i32
    %c0_i32_1 = arith.constant 0 : i32
    return %c0_i32, %c0_i32_0 : i32, i32
  }
  func.func @transform_6(%arg0: i32) -> (i32, i32) {
    %c0_i32 = arith.constant 0 : i32
    %c0_i32_0 = arith.constant 0 : i32
    return %arg0, %c0_i32 : i32, i32
  }
}

</mosaic_0001>

<bundles_post_ra>
// kernel: tpu_custom_call.1
= control target key start
LH: loop header
LB: loop body
LE: loop exit
PB: predicated region body
PF: predicated region fallthrough
CT: control target
= control target key end

     0   :  { %11 = vsyncpa [#allocation3], 0  ;;  %s874_s0 = inlined_call_operand.hbm [shape: f32[16,32], index: 0, kind: input, shape index: {}]   ;;  %s875_s1 = inlined_call_operand.hbm [shape: bf16[32,128], index: 1, kind: input, shape index: {}]   ;;  %s876_s2 = inlined_call_operand.hbm [shape: bf16[128,128], index: 2, kind: input, shape index: {}]   ;;  %s877_s3 = inlined_call_operand.hbm [shape: bf16[128,128], index: 3, kind: input, shape index: {}]   ;;  %s878_s4 = inlined_call_operand.hbm [shape: bf16[128,128], index: 4, kind: input, shape index: {}]   ;;  %s879_s5 = inlined_call_operand.vmem [shape: f32[4,128], index: 5, kind: input, shape index: {}]   ;;  %s880_s6 = inlined_call_operand.hbm [shape: f32[16,128], index: 6, kind: output, shape index: {}]  }
   0x1   :  { %12 = vsyncpa [#allocation6], 0 }
   0x2   :  { %13 = vsyncpa [#allocation9], 0  ;;  %s32_s23 = sshll.u32 %s875_s1, 4  ;;  %s33_s23 = int_to_ptr.hbm [resolvable:$true] %s32_s23 }
   0x3   :  { %14 = vsyncpa [#allocation4], 0  ;;  %s779_s24 = smov [#allocation5]   ;;  %s58_s28 = sshll.u32 %s877_s3, 4  ;;  %s59_s28 = int_to_ptr.hbm [resolvable:$true] %s58_s28 }
   0x4   :  { %s34_s25 = sshll.u32 %s779_s24, 4  ;;  %s780_s29 = smov 64   ;;  %s35_s25 = int_to_ptr.vmem [resolvable:$true] %s34_s25 }
   0x5   :  { %s781_s30 = smov 4   ;;  %s782_s7 = smov [#allocation8]  }
   0x6   :  { %40 = dma.hbm_to_vmem [thread:$0]  %s33_s23, 256, %s35_s25, [#allocation6], %s780_s29, %s780_s29, %s781_s30  }
   0x7   :  { %s60_s8 = sshll.u32 %s782_s7, 4  ;;  %s19_s10 = sshll.u32 %s874_s0, 4  ;;  %s61_s8 = int_to_ptr.vmem [resolvable:$true] %s60_s8  ;;  %s20_s10 = int_to_ptr.hbm [resolvable:$true] %s19_s10 }
   0x8   :  { %66 = dma.hbm_to_vmem [thread:$0]  %s59_s28, 1024, %s61_s8, [#allocation9], %s780_s29, %s780_s29, %s781_s30  }
   0x9   :  { %s783_s3 = smov [#allocation2]   ;;  %s45_s14 = sshll.u32 %s876_s2, 4  ;;  %s46_s14 = int_to_ptr.hbm [resolvable:$true] %s45_s14 }
   0xa   :  { %s21_s11 = sshll.u32 %s783_s3, 4  ;;  %s784_s15 = smov 128   ;;  %s22_s11 = int_to_ptr.vmem [resolvable:$true] %s21_s11 }
   0xb   :  { %s785_s16 = smov 8   ;;  %s786_s0 = smov [#allocation7]  }
   0xc   :  { %27 = dma.hbm_to_vmem [thread:$0]  %s20_s10, 256, %s22_s11, [#allocation3], %s784_s15, %s784_s15, %s785_s16  }
   0xd   :  { %s47_s17 = sshll.u32 %s786_s0, 4  ;;  %s71_s20 = sshll.u32 %s878_s4, 4  ;;  %s48_s17 = int_to_ptr.vmem [resolvable:$true] %s47_s17  ;;  %s72_s20 = int_to_ptr.hbm [resolvable:$true] %s71_s20 }
   0xe   :  { %53 = dma.hbm_to_vmem [thread:$0]  %s46_s14, 1024, %s48_s17, [#allocation6], %s780_s29, %s780_s29, %s781_s30  }
   0xf   :  { %s787_s2 = smov [#allocation10]  }
  0x10   :  { %s73_s21 = sshll.u32 %s787_s2, 4  ;;  %s74_s21 = int_to_ptr.vmem [resolvable:$true] %s73_s21 }
  0x11   :  { %79 = dma.hbm_to_vmem [thread:$0]  %s72_s20, 1024, %s74_s21, [#allocation9], %s780_s29, %s780_s29, %s781_s30  }
  0x12   :  { %771 = dma.done.wait [#allocation3], 256  }
  0x13   :  { %772 = vsyncadd [#allocation3], 4294967040 }
  0x14   :  { %773 = dma.done.wait [#allocation6], 1280  }
  0x15   :  { %774 = vsyncadd [#allocation6], 4294966016 }
  0x16   :  { %775 = dma.done.wait [#allocation9], 2048  }
  0x17   :  { %776 = vsyncadd [#allocation9], 4294965248  ;;  %v588_v0 = vld [vmem:[#allocation5 + $0x8] sm:$0xff]  ;;  %v587_v2 = vld [vmem:[#allocation5] sm:$0xff]  ;;  %vm174_vm0 = vcmask 261120   ;;  %s788_s29 = smov [#allocation11]  }
  0x18   :  { %v596_v1 = vld [vmem:[#allocation7 + $0x38] sm:$0xff]  ;;  %184 = vmatpush.bf16.msra.mxu0 %v588_v0  ;;  %v159_v3 = vld [vmem:[#allocation2] sm:$0xff]  ;;  %v595_v4 = vld [vmem:[#allocation7 + $0x30] sm:$0xff]  ;;  %s464_s30 = sshll.u32 %s788_s29, 4  ;;  %s466_s9 = sshll.u32 %s880_s6, 4  ;;  %s465_s30 = int_to_ptr.vmem [resolvable:$true] %s464_s30  ;;  %s467_s9 = int_to_ptr.hbm [resolvable:$true] %s466_s9 }
  0x19   :  { %244 = vmatpush.bf16.msra.mxu1 %v596_v1  ;;  %v160_v5 = vpack.c.bf16 %v159_v3, %v159_v3  ;;  %v594_v6 = vld [vmem:[#allocation7 + $0x28] sm:$0xff]  ;;  %v593_v7 = vld [vmem:[#allocation7 + $0x20] sm:$0xff]  ;;  %v592_v8 = vld [vmem:[#allocation7 + $0x18] sm:$0xff] }
  0x1a   :  { %v390_v9 = vld [vmem:[#allocation2 + $0x8] sm:$0xff]  ;;  %v591_v10 = vld [vmem:[#allocation7 + $0x10] sm:$0xff]  ;;  %v589_v13 = vld [vmem:[#allocation7] sm:$0xff] }
  0x1b   :  { %v391_v11 = vpack.c.bf16 %v390_v9, %v390_v9  ;;  %v590_v12 = vld [vmem:[#allocation7 + $0x8] sm:$0xff]  ;;  %v604_v14 = vld [vmem:[#allocation8 + $0x38] sm:$0xff]  ;;  %v603_v15 = vld [vmem:[#allocation8 + $0x30] sm:$0xff] }
  0x1c   :  { %185 = vmatpush.bf16.msra.mxu0 %v587_v2  ;;  %310 = vmatpush.bf16.msra.mxu2 %v604_v14  ;;  %v623_v16 = vld [vmem:[%s879_s5] ss:$0 sm:$0xff]  ;;  %v602_v17 = vld [vmem:[#allocation8 + $0x28] sm:$0xff]  ;;  %v600_v24 = vld [vmem:[#allocation8 + $0x18] sm:$0xff] }
  0x1d   :  { %245 = vmatpush.bf16.msra.mxu1 %v595_v4  ;;  %v601_v20 = vld [vmem:[#allocation8 + $0x20] sm:$0xff]  ;;  %v599_v26 = vld [vmem:[#allocation8 + $0x10] sm:$0xff]  ;;  %v598_v33 = vld [vmem:[#allocation8 + $0x8] sm:$0xff] }
  0x1e   :  { %v597_v34 = vld [vmem:[#allocation8] sm:$0xff]  ;;  %v612_v35 = vld [vmem:[#allocation10 + $0x38] sm:$0xff]  ;;  %v611_v36 = vld [vmem:[#allocation10 + $0x30] sm:$0xff] }
  0x1f   :  { %489 = vmatmul.msk.bf16.vlgmr.msra.gmra.mxu0 %vm174_vm0, %v160_v5  ;;  %376 = vmatpush.bf16.msra.mxu3 %v612_v35  ;;  %v624_v37 = vld [vmem:[%s879_s5 + $0x1] ss:$0 sm:$0xff]  ;;  %v610_v38 = vld [vmem:[#allocation10 + $0x28] sm:$0xff]  ;;  %v608_v45 = vld [vmem:[#allocation10 + $0x18] sm:$0xff] }
  0x20   :  { %401 = vmatpush.bf16.msrb.mxu0 %v588_v0  ;;  %311 = vmatpush.bf16.msra.mxu2 %v603_v15  ;;  %v609_v41 = vld [vmem:[#allocation10 + $0x20] sm:$0xff]  ;;  %v607_v47 = vld [vmem:[#allocation10 + $0x10] sm:$0xff]  ;;  %v606_v54 = vld [vmem:[#allocation10 + $0x8] sm:$0xff] }
  0x21   :  { %246 = vmatpush.bf16.msra.mxu1 %v594_v6  ;;  %v605_v55 = vld [vmem:[#allocation10] sm:$0xff] }
  0x22   :  { %v625_v56 = vld [vmem:[%s879_s5 + $0x2] ss:$0 sm:$0xff]  ;;  %v626_v5 = vld [vmem:[%s879_s5 + $0x3] ss:$0 sm:$0xff] }
  0x23   :  { %377 = vmatpush.bf16.msra.mxu3 %v611_v36 }
  0x24   :  { %402 = vmatpush.bf16.msrb.mxu0 %v587_v2  ;;  %312 = vmatpush.bf16.msra.mxu2 %v602_v17 }
  0x25   :  { %247 = vmatpush.bf16.msra.mxu1 %v593_v7 }
  0x27   :  { %378 = vmatpush.bf16.msra.mxu3 %v610_v38 }
  0x28   :  { %412 = vmatpush.bf16.msra.mxu0 %v596_v1  ;;  %313 = vmatpush.bf16.msra.mxu2 %v601_v20 }
  0x29   :  { %248 = vmatpush.bf16.msra.mxu1 %v592_v8 }
  0x2b   :  { %379 = vmatpush.bf16.msra.mxu3 %v609_v41 }
  0x2c   :  { %413 = vmatpush.bf16.msra.mxu0 %v595_v4  ;;  %314 = vmatpush.bf16.msra.mxu2 %v600_v24 }
  0x2d   :  { %249 = vmatpush.bf16.msra.mxu1 %v591_v10 }
  0x2f   :  { %586 = vmatmul.msk.bf16.vlgmr.msrb.gmra.mxu0 %vm174_vm0, %v391_v11  ;;  %380 = vmatpush.bf16.msra.mxu3 %v608_v45 }
  0x30   :  { %414 = vmatpush.bf16.msra.mxu0 %v594_v6  ;;  %315 = vmatpush.bf16.msra.mxu2 %v599_v26 }
  0x31   :  { %250 = vmatpush.bf16.msra.mxu1 %v590_v12 }
  0x33   :  { %381 = vmatpush.bf16.msra.mxu3 %v607_v47 }
  0x34   :  { %415 = vmatpush.bf16.msra.mxu0 %v593_v7  ;;  %316 = vmatpush.bf16.msra.mxu2 %v598_v33 }
  0x35   :  { %251 = vmatpush.bf16.msra.mxu1 %v589_v13 }
  0x37   :  { %382 = vmatpush.bf16.msra.mxu3 %v606_v54 }
  0x38   :  { %416 = vmatpush.bf16.msra.mxu0 %v592_v8  ;;  %317 = vmatpush.bf16.msra.mxu2 %v597_v34 }
  0x39   :  { %429 = vmatpush.bf16.msrb.mxu1 %v604_v14 }
  0x3b   :  { %383 = vmatpush.bf16.msra.mxu3 %v605_v55 }
  0x3c   :  { %417 = vmatpush.bf16.msra.mxu0 %v591_v10  ;;  %446 = vmatpush.bf16.msrb.mxu2 %v612_v35 }
  0x3d   :  { %430 = vmatpush.bf16.msrb.mxu1 %v603_v15 }
  0x40   :  { %418 = vmatpush.bf16.msra.mxu0 %v590_v12  ;;  %447 = vmatpush.bf16.msrb.mxu2 %v611_v36 }
  0x41   :  { %431 = vmatpush.bf16.msrb.mxu1 %v602_v17 }
  0x44   :  { %419 = vmatpush.bf16.msra.mxu0 %v589_v13  ;;  %448 = vmatpush.bf16.msrb.mxu2 %v610_v38 }
  0x45   :  { %432 = vmatpush.bf16.msrb.mxu1 %v601_v20 }
  0x48   :  { %449 = vmatpush.bf16.msrb.mxu2 %v609_v41 }
  0x49   :  { %433 = vmatpush.bf16.msrb.mxu1 %v600_v24 }
  0x4c   :  { %450 = vmatpush.bf16.msrb.mxu2 %v608_v45 }
  0x4d   :  { %434 = vmatpush.bf16.msrb.mxu1 %v599_v26 }
  0x50   :  { %451 = vmatpush.bf16.msrb.mxu2 %v607_v47 }
  0x51   :  { %435 = vmatpush.bf16.msrb.mxu1 %v598_v33 }
  0x54   :  { %452 = vmatpush.bf16.msrb.mxu2 %v606_v54 }
  0x55   :  { %436 = vmatpush.bf16.msrb.mxu1 %v597_v34 }
  0x58   :  { %453 = vmatpush.bf16.msrb.mxu2 %v605_v55 }
  0x9c   :  { %v187_v18 = vpop.f32.mrf.mxu0 }
  0x9d   :  { %v188_v19 = vadd.f32 %v623_v16, %v187_v18 }
  0x9f   :  { %v192_v21 = vmul.f32 0.01, %v188_v19  ;;  %vm191_vm1 = vcmp.gt.f32.partialorder %v188_v19, 0.0 }
  0xa1   :  { %v193_v22 = vsel %vm191_vm1, %v188_v19, %v192_v21 }
  0xa2   :  { %v194_v23 = vpack.c.bf16 %v193_v22, %v193_v22 }
  0xa4   :  { %v189_v25 = vpop.f32.mrf.mxu0  ;;  %252 = vmatmul.bf16.vlgmr.msra.gmra.mxu1 %v194_v23 }
  0xac   :  { %v404_v27 = vpop.f32.mrf.mxu0 }
  0xad   :  { %v405_v28 = vadd.f32 %v623_v16, %v404_v27 }
  0xaf   :  { %vm408_vm2 = vcmp.gt.f32.partialorder %v405_v28, 0.0  ;;  %v409_v29 = vmul.f32 0.01, %v405_v28 }
  0xb1   :  { %v410_v30 = vsel %vm408_vm2, %v405_v28, %v409_v29 }
  0xb2   :  { %v411_v31 = vpack.c.bf16 %v410_v30, %v410_v30 }
  0xb4   :  { %v406_v32 = vpop.f32.mrf.mxu0  ;;  %420 = vmatmul.bf16.vlgmr.msra.gmra.mxu0 %v411_v31 }
 0x121   :  { %v253_v39 = vpop.f32.mrf.mxu1 }
 0x122   :  { %v254_v40 = vadd.f32 %v624_v37, %v253_v39 }
 0x124   :  { %v258_v42 = vmul.f32 0.01, %v254_v40  ;;  %vm257_vm3 = vcmp.gt.f32.partialorder %v254_v40, 0.0 }
 0x126   :  { %v259_v43 = vsel %vm257_vm3, %v254_v40, %v258_v42 }
 0x127   :  { %v260_v44 = vpack.c.bf16 %v259_v43, %v259_v43 }
 0x129   :  { %v255_v46 = vpop.f32.mrf.mxu1  ;;  %318 = vmatmul.bf16.vlgmr.msra.gmra.mxu2 %v260_v44 }
 0x131   :  { %v421_v48 = vpop.f32.mrf.mxu0 }
 0x132   :  { %v422_v49 = vadd.f32 %v624_v37, %v421_v48 }
 0x134   :  { %vm425_vm4 = vcmp.gt.f32.partialorder %v422_v49, 0.0  ;;  %v426_v50 = vmul.f32 0.01, %v422_v49 }
 0x136   :  { %v427_v51 = vsel %vm425_vm4, %v422_v49, %v426_v50 }
 0x137   :  { %v428_v52 = vpack.c.bf16 %v427_v51, %v427_v51 }
 0x139   :  { %v423_v53 = vpop.f32.mrf.mxu0  ;;  %437 = vmatmul.bf16.vlgmr.msrb.gmra.mxu1 %v428_v52 }
 0x1ac   :  { %v319_v57 = vpop.f32.mrf.mxu2 }
 0x1ad   :  { %v320_v58 = vadd.f32 %v625_v56, %v319_v57 }
 0x1af   :  { %v324_v59 = vmul.f32 0.01, %v320_v58  ;;  %vm323_vm5 = vcmp.gt.f32.partialorder %v320_v58, 0.0 }
 0x1b1   :  { %v325_v60 = vsel %vm323_vm5, %v320_v58, %v324_v59 }
 0x1b2   :  { %v326_v61 = vpack.c.bf16 %v325_v60, %v325_v60 }
 0x1b4   :  { %v321_v62 = vpop.f32.mrf.mxu2  ;;  %384 = vmatmul.bf16.vlgmr.msra.gmra.mxu3 %v326_v61 }
 0x1b6   :  { %v438_v63 = vpop.f32.mrf.mxu1 }
 0x1b7   :  { %v439_v0 = vadd.f32 %v625_v56, %v438_v63 }
 0x1b9   :  { %vm442_vm6 = vcmp.gt.f32.partialorder %v439_v0, 0.0  ;;  %v443_v1 = vmul.f32 0.01, %v439_v0 }
 0x1bb   :  { %v444_v2 = vsel %vm442_vm6, %v439_v0, %v443_v1 }
 0x1bc   :  { %v445_v3 = vpack.c.bf16 %v444_v2, %v444_v2 }
 0x1be   :  { %v440_v4 = vpop.f32.mrf.mxu1  ;;  %454 = vmatmul.bf16.vlgmr.msrb.gmra.mxu2 %v445_v3 }
 0x237   :  { %v385_v6 = vpop.f32.mrf.mxu3 }
 0x238   :  { %v386_v7 = vadd.f32 %v626_v5, %v385_v6 }
 0x23a   :  { %389 = vst [vmem:[#allocation11] sm:$0xff] %v386_v7 }
 0x23f   :  { %v387_v8 = vpop.f32.mrf.mxu3 }
 0x241   :  { %v455_v9 = vpop.f32.mrf.mxu2 }
 0x242   :  { %v456_v10 = vadd.f32 %v626_v5, %v455_v9 }
 0x244   :  { %459 = vst [vmem:[#allocation11 + $0x8] sm:$0xff] %v456_v10 }
 0x245   :  { %472 = dma.vmem_to_hbm [thread:$0]  %s465_s30, 256, %s467_s9, [#allocation4], %s784_s15, %s784_s15, %s785_s16  }
 0x249   :  { %v457_v11 = vpop.f32.mrf.mxu2 }
 0x24a   :  { %777 = dma.done.wait [#allocation4], 256  }
 0x24b   :  { %778 = vsyncadd [#allocation4], 4294967040 }
 0x24c   :  { %477 = vsyncpa [#allocation3], 1 }
 0x24d   :  { %478 = vsyncpa [#allocation6], 1 }
 0x24e   :  { %479 = vsyncpa [#allocation9], 1 }
 0x24f   :  { %480 = vsyncpa [#allocation4], 1 }

</bundles_post_ra>
